<compile_context>
chip_gen: v7x
topology: tpu7x:2x2x1
jax: 0.10.0
libtpu: 0.0.40
codegen_flags: <defaults>
</compile_context>

<pallas_src>
import jax
import jax.numpy as jnp
from jax.experimental import pallas as pl
from jax.experimental.pallas import tpu as pltpu


def dae_kernel(x_ref, w1_ref, b1_ref, w2_ref, b2_ref, out_ref):
    # ---- encoder: Linear + ReLU ----
    x = x_ref[...]
    if x.dtype != jnp.bfloat16:          # only cast if producer gave f32
        x = x.astype(jnp.bfloat16)
    h = jnp.dot(x, w1_ref[...], preferred_element_type=jnp.float32)
    h = jnp.maximum(h + b1_ref[...], 0.0)

    # ---- decoder: Linear + Sigmoid ----
    y = jnp.dot(h.astype(jnp.bfloat16), w2_ref[...],
                preferred_element_type=jnp.float32)
    y = y + b2_ref[...]
    # sigmoid(y) = 0.5 * (tanh(y/2) + 1): single native EUP transcendental.
    out_ref[...] = (0.5 * (jnp.tanh(0.5 * y) + 1.0)).astype(out_ref.dtype)


def _choose_tile_n(n, tile_n_max, min_steps=4):
    """Pick a batch tile: multiple of 8, <= tile_n_max, and (when the batch is
    large enough) at least `min_steps` grid steps so v7x's two TensorCores each
    get >= 2 pipelined steps."""
    n8 = ((n + 7) // 8) * 8
    tile = max(8, (n8 // min_steps) // 8 * 8)
    tile = min(tile, tile_n_max, n8)
    if tile < 64:                    # tiny batches: don't over-split
        tile = min(n8, tile_n_max)
    return tile


def _vmem_budget_cap(frac=0.55, fallback_bytes=64 * 1024 * 1024):
    """Generation-aware VMEM cap (~55% of physical per-core VMEM)."""
    try:
        cap = pltpu.get_tpu_info().vmem_capacity_bytes
    except Exception:                # pragma: no cover - conservative fallback
        cap = fallback_bytes
    return int(frac * cap)


def denoising_autoencoder(x, w1, b1, w2, b2, *, tile_n_max=256,
                          out_dtype=jnp.bfloat16):
    """Fused DAE forward: sigmoid(relu(x @ w1 + b1) @ w2 + b2).

    x:  [N, F] bf16 (or f32)
    w1: [F, H] bf16   b1: [1, H] f32
    w2: [H, F] bf16   b2: [1, F] f32
    returns [N, F] in `out_dtype` (bf16 by default: halves output HBM bytes).
    """
    n, f = x.shape
    h = w1.shape[1]

    tile_n = _choose_tile_n(n, tile_n_max)
    n_pad = pl.cdiv(n, tile_n) * tile_n
    if n_pad != n:
        x = jnp.pad(x, ((0, n_pad - n), (0, 0)))
    grid = (n_pad // tile_n,)

    x_bytes = jnp.dtype(x.dtype).itemsize
    o_bytes = jnp.dtype(out_dtype).itemsize

    # VMEM budget: double-buffered x/out tiles, single-buffered bf16 weights
    # and f32 biases, plus f32 h/y intermediates that Mosaic stages in VMEM.
    vmem_need = (
        2 * tile_n * f * x_bytes            # x tile, double-buffered
        + 2 * tile_n * f * o_bytes          # out tile, double-buffered
        + (f * h + h * f) * 2               # bf16 weights, single-buffered
        + (h + f) * 4                       # f32 biases, single-buffered
        + tile_n * (h + f) * 4              # f32 h / y intermediates
    )
    vmem_limit = min(max(int(vmem_need * 2), 8 * 1024 * 1024),
                     _vmem_budget_cap())

    cost = pl.CostEstimate(
        flops=4 * n_pad * f * h,                         # two matmuls
        transcendentals=n_pad * f,                       # tanh (sigmoid)
        bytes_accessed=(n_pad * f * (x_bytes + o_bytes)  # x in + out writeback
                        + 2 * f * h * 2                  # bf16 weights
                        + (h + f) * 4),                  # biases
    )

    resident = pl.Buffered(1)   # grid-constant operands: no second buffer

    out = pl.pallas_call(
        dae_kernel,
        out_shape=jax.ShapeDtypeStruct((n_pad, f), out_dtype),
        grid_spec=pl.GridSpec(
            grid=grid,
            in_specs=[
                pl.BlockSpec((tile_n, f), lambda i: (i, 0)),      # x (streams)
                pl.BlockSpec((f, h), lambda i: (0, 0),
                             pipeline_mode=resident),             # encoder W
                pl.BlockSpec((1, h), lambda i: (0, 0),
                             pipeline_mode=resident),             # encoder b
                pl.BlockSpec((h, f), lambda i: (0, 0),
                             pipeline_mode=resident),             # decoder W
                pl.BlockSpec((1, f), lambda i: (0, 0),
                             pipeline_mode=resident),             # decoder b
            ],
            out_specs=pl.BlockSpec((tile_n, f), lambda i: (i, 0)),
        ),
        compiler_params=pltpu.CompilerParams(
            dimension_semantics=("parallel",),
            vmem_limit_bytes=vmem_limit,
        ),
        cost_estimate=cost,
    )(x, w1, b1, w2, b2)

    if n_pad != n:
        out = out[:n]
    return out


def init_params(key, in_features, hidden):
    k1, k2, k3, k4 = jax.random.split(key, 4)
    # "Kaiming-ish" uniform init matching torch.nn.Linear fan-in scaling.
    s1 = 1.0 / jnp.sqrt(in_features)
    s2 = 1.0 / jnp.sqrt(hidden)
    w1 = jax.random.uniform(k1, (in_features, hidden), jnp.float32, -s1, s1)
    b1 = jax.random.uniform(k2, (1, hidden), jnp.float32, -s1, s1)
    w2 = jax.random.uniform(k3, (hidden, in_features), jnp.float32, -s2, s2)
    b2 = jax.random.uniform(k4, (1, in_features), jnp.float32, -s2, s2)
    # Weights in bf16 (MXU-native), biases stay f32.
    return w1.astype(jnp.bfloat16), b1, w2.astype(jnp.bfloat16), b2


def reference_forward(x_f32, w1, b1, w2, b2):
    # Mirrors the kernel's numerics: bf16-rounded matmul operands, f32 accum,
    # f32 elementwise ops.
    h = jnp.maximum(x_f32 @ w1.astype(jnp.float32) + b1, 0.0)
    hb = h.astype(jnp.bfloat16).astype(jnp.float32)
    return jax.nn.sigmoid(hb @ w2.astype(jnp.float32) + b2)


if __name__ == "__main__":
    batch, in_features, hidden = 512, 256, 128

    key = jax.random.PRNGKey(0)
    kx, kp = jax.random.split(key)
    x_f32 = jax.random.normal(kx, (batch, in_features), jnp.float32)
    w1, b1, w2, b2 = init_params(kp, in_features, hidden)

    # Upstream producer hands the kernel bf16 activations directly (halves
    # input DMA bytes; no extra wrapper convert on the kernel path).
    x = x_f32.astype(jnp.bfloat16)

    out = denoising_autoencoder(x, w1, b1, w2, b2)
    out = jax.block_until_ready(out)

    assert out.shape == (batch, in_features)
    assert out.dtype == jnp.bfloat16

    ref = reference_forward(x.astype(jnp.float32), w1, b1, w2, b2)
    max_err = float(jnp.max(jnp.abs(out.astype(jnp.float32) - ref)))
    assert max_err < 2e-2, max_err

    print("KERNEL_OK")
</pallas_src>

<mosaic_0001>
module attributes {stable_mosaic.version = 11 : i64} {
  func.func @dae_kernel(%arg0: i32, %arg1: memref<128x256xbf16, #tpu.memory_space<vmem>>, %arg2: memref<256x128xbf16, #tpu.memory_space<vmem>>, %arg3: memref<1x128xf32, #tpu.memory_space<vmem>>, %arg4: memref<128x256xbf16, #tpu.memory_space<vmem>>, %arg5: memref<1x256xf32, #tpu.memory_space<vmem>>, %arg6: memref<128x256xbf16, #tpu.memory_space<vmem>>) attributes {dimension_semantics = [#tpu.dimension_semantics<parallel>], iteration_bounds = array<i64: 4>, scalar_prefetch = 0 : i64, scratch_operands = 0 : i64, tpu.core_type = #tpu.core_type<tc>, window_params = [{transform_indices = @transform_0, window_bounds = array<i64: 128, 256>}, {pipeline_mode = #tpu.pipeline_mode<synchronous>, transform_indices = @transform_1, window_bounds = array<i64: 256, 128>}, {pipeline_mode = #tpu.pipeline_mode<synchronous>, transform_indices = @transform_2, window_bounds = array<i64: 1, 128>}, {pipeline_mode = #tpu.pipeline_mode<synchronous>, transform_indices = @transform_3, window_bounds = array<i64: 128, 256>}, {pipeline_mode = #tpu.pipeline_mode<synchronous>, transform_indices = @transform_4, window_bounds = array<i64: 1, 256>}, {transform_indices = @transform_5, window_bounds = array<i64: 128, 256>}]} {
    %c0 = arith.constant 0 : index
    %c0_0 = arith.constant 0 : index
    %0 = vector.load %arg1[%c0, %c0_0] : memref<128x256xbf16, #tpu.memory_space<vmem>>, vector<128x256xbf16>
    %c0_1 = arith.constant 0 : index
    %c0_2 = arith.constant 0 : index
    %1 = vector.load %arg2[%c0_1, %c0_2] : memref<256x128xbf16, #tpu.memory_space<vmem>>, vector<256x128xbf16>
    %cst = arith.constant dense<0.000000e+00> : vector<128x128xf32>
    %2 = tpu.matmul %0, %1, %cst {dimension_numbers = #tpu.dot_dimension_numbers<[1], [0], [0], [1], [0, 0, 1, 1], [], []>} : vector<128x256xbf16>, vector<256x128xbf16>, vector<128x128xf32> -> vector<128x128xf32>
    %c0_3 = arith.constant 0 : index
    %c0_4 = arith.constant 0 : index
    %3 = vector.load %arg3[%c0_3, %c0_4] : memref<1x128xf32, #tpu.memory_space<vmem>>, vector<1x128xf32>
    %4 = vector.broadcast %3 : vector<1x128xf32> to vector<128x128xf32>
    %5 = arith.addf %2, %4 : vector<128x128xf32>
    %cst_5 = arith.constant 0.000000e+00 : f32
    %6 = vector.broadcast %cst_5 : f32 to vector<128x128xf32>
    %7 = arith.maximumf %5, %6 : vector<128x128xf32>
    %8 = arith.truncf %7 : vector<128x128xf32> to vector<128x128xbf16>
    %c0_6 = arith.constant 0 : index
    %c0_7 = arith.constant 0 : index
    %9 = vector.load %arg4[%c0_6, %c0_7] : memref<128x256xbf16, #tpu.memory_space<vmem>>, vector<128x256xbf16>
    %cst_8 = arith.constant dense<0.000000e+00> : vector<128x256xf32>
    %10 = tpu.matmul %8, %9, %cst_8 {dimension_numbers = #tpu.dot_dimension_numbers<[1], [0], [0], [1], [0, 0, 1, 1], [], []>} : vector<128x128xbf16>, vector<128x256xbf16>, vector<128x256xf32> -> vector<128x256xf32>
    %c0_9 = arith.constant 0 : index
    %c0_10 = arith.constant 0 : index
    %11 = vector.load %arg5[%c0_9, %c0_10] : memref<1x256xf32, #tpu.memory_space<vmem>>, vector<1x256xf32>
    %12 = vector.broadcast %11 : vector<1x256xf32> to vector<128x256xf32>
    %13 = arith.addf %10, %12 : vector<128x256xf32>
    %cst_11 = arith.constant 5.000000e-01 : f32
    %14 = vector.broadcast %cst_11 : f32 to vector<128x256xf32>
    %15 = arith.mulf %14, %13 : vector<128x256xf32>
    %16 = math.tanh %15 : vector<128x256xf32>
    %cst_12 = arith.constant 1.000000e+00 : f32
    %17 = vector.broadcast %cst_12 : f32 to vector<128x256xf32>
    %18 = arith.addf %16, %17 : vector<128x256xf32>
    %cst_13 = arith.constant 5.000000e-01 : f32
    %19 = vector.broadcast %cst_13 : f32 to vector<128x256xf32>
    %20 = arith.mulf %19, %18 : vector<128x256xf32>
    %21 = arith.truncf %20 : vector<128x256xf32> to vector<128x256xbf16>
    %c0_14 = arith.constant 0 : index
    %c0_15 = arith.constant 0 : index
    %22 = vector.load %arg6[%c0_14, %c0_15] : memref<128x256xbf16, #tpu.memory_space<vmem>>, vector<128x256xbf16>
    tpu.vector_store %arg6[%c0_14, %c0_15], %21 {strides = array<i32>} : memref<128x256xbf16, #tpu.memory_space<vmem>>, vector<128x256xbf16>,
    return
  }
  func.func @transform_0(%arg0: i32) -> (i32, i32) {
    %c0_i32 = arith.constant 0 : i32
    %c0_i32_0 = arith.constant 0 : i32
    return %arg0, %c0_i32 : i32, i32
  }
  func.func @transform_1(%arg0: i32) -> (i32, i32) {
    %c0_i32 = arith.constant 0 : i32
    %c0_i32_0 = arith.constant 0 : i32
    %c0_i32_1 = arith.constant 0 : i32
    return %c0_i32, %c0_i32_0 : i32, i32
  }
  func.func @transform_2(%arg0: i32) -> (i32, i32) {
    %c0_i32 = arith.constant 0 : i32
    %c0_i32_0 = arith.constant 0 : i32
    %c0_i32_1 = arith.constant 0 : i32
    return %c0_i32, %c0_i32_0 : i32, i32
  }
  func.func @transform_3(%arg0: i32) -> (i32, i32) {
    %c0_i32 = arith.constant 0 : i32
    %c0_i32_0 = arith.constant 0 : i32
    %c0_i32_1 = arith.constant 0 : i32
    return %c0_i32, %c0_i32_0 : i32, i32
  }
  func.func @transform_4(%arg0: i32) -> (i32, i32) {
    %c0_i32 = arith.constant 0 : i32
    %c0_i32_0 = arith.constant 0 : i32
    %c0_i32_1 = arith.constant 0 : i32
    return %c0_i32, %c0_i32_0 : i32, i32
  }
  func.func @transform_5(%arg0: i32) -> (i32, i32) {
    %c0_i32 = arith.constant 0 : i32
    %c0_i32_0 = arith.constant 0 : i32
    return %arg0, %c0_i32 : i32, i32
  }
}

</mosaic_0001>

<bundles_post_ra>
// kernel: tpu_custom_call.1
= control target key start
LH: loop header
LB: loop body
LE: loop exit
PB: predicated region body
PF: predicated region fallthrough
CT: control target
= control target key end

     0   :  { %10 = vsyncpa [#allocation3], 0  ;;  %s2106_s0 = inlined_call_operand.hbm [shape: bf16[512,256], index: 0, kind: input, shape index: {}]   ;;  %s2107_s1 = inlined_call_operand.hbm [shape: bf16[256,128], index: 1, kind: input, shape index: {}]   ;;  %s2108_s2 = inlined_call_operand.vmem [shape: f32[1,128], index: 2, kind: input, shape index: {}]   ;;  %s2109_s3 = inlined_call_operand.hbm [shape: bf16[128,256], index: 3, kind: input, shape index: {}]   ;;  %s2110_s4 = inlined_call_operand.vmem [shape: f32[1,256], index: 4, kind: input, shape index: {}]   ;;  %s2111_s5 = inlined_call_operand.hbm [shape: bf16[512,256], index: 5, kind: output, shape index: {}]  }
   0x1   :  { %12 = vsyncpa [#allocation3 + $0x1], 0 }
   0x2   :  { %13 = vsyncpa [#allocation6], 0 }
   0x3   :  { %14 = vsyncpa [#allocation4], 0 }
   0x4   :  { %16 = vsyncpa [#allocation4 + $0x1], 0  ;;  %s1766_s18 = smov 0   ;;  %s1768_s19 = smov 0  }
   0x5   :  { %s1770_s20 = smov 0   ;;  %s1772_s21 = smov 0  }
   0x6 LB: > { %s1787_s22 = sadd.s32 4294967295, %s1723_s21   ;;  %s1196_s23 = sadd.s32 4294967294, %s1723_s21   ;;  %s1723_s21 = sphi %s1772_s21, %s2130_s21   ;;  %s1719_s20 = sphi %s1770_s20, %s2129_s20   ;;  %s1715_s19 = sphi %s1768_s19, %s2128_s19   ;;  %s1711_s18 = sphi %s1766_s18, %s2127_s18  }
   0x7   : > { %p42_p0 = scmp.ne.s32.totalorder %s1715_s19, %s1711_s18  ;;  %p2112_p1 = scmp.eq.s32.totalorder %s1787_s22, 0 }
   0x8   : > { %p156_p3 = scmp.eq.s32.totalorder %s1196_s23, 3  ;;  %p1197_p5 = scmp.ge.s32.totalorder %s1723_s21, 1 }
   0x9   : > { %p1796_p4 = por %p2112_p1, %p42_p0  ;;  %p163_p7 = scmp.lt.s32.totalorder %s1723_s21, 5 }
   0xa   : > { %p1801_p6 = por %p156_p3, %p42_p0  ;;  %s1725_s27 = smov [#allocation5]  }
   0xb   : > { %s2115_s24 = scalar_select %p1796_p4, 1, 0 }
   0xc   : > { %s2116_s25 = scalar_select %p1801_p6, 1, 0 }
   0xd   : > { %p1806_p8 = pnand %p1197_p5, %p163_p7  ;;  %s175_s28 = sshll.u32 %s1725_s27, 4  ;;  %s176_s28 = int_to_ptr.vmem [resolvable:$true] %s175_s28 }
   0xe   : > { %s1726_s30 = smov [#allocation7]   ;;  %s1567_s9 = scalar_lea.hbm %s2107_s1, 2048 }
   0xf   : > { %s2117_s26 = scalar_select %p1806_p8, 1, 0 }
  0x10   : > { %p1377_p9 = pneg %p1806_p8  ;;  %s191_s6 = sshll.u32 %s1726_s30, 4  ;;  %s1818_s6 = int_to_ptr.vmem [resolvable:$true] %s191_s6 }
  0x11   : > { %p1568_p11 = scmp.ne.s32.totalorder %s2107_s1, %s1567_s9  ;;  %p1574_p3 = scmp.lt.u32.totalorder %s1567_s9, %s2107_s1 }
  0x12   : > { %p1814_p10 = pnand %p1377_p9, %p2112_p1 }
  0x14   : > { %p1569_p12 = pneg %p1814_p10 }
  0x16   : > { %p1570_p13 = pnand %p1569_p12, %p1568_p11 }
  0x18   : > { %p1571_p0 = pneg %p1570_p13 }
  0x1a   : > { %p1576_p5 = pnand %p1574_p3, %p1571_p0 }
  0x1c   : > { %1579 = shalt.err (!%p1576_p5)
}
  0x1d   : > { %s1580_s14 = scalar_lea.vmem %s176_s28, 2048  ;;  %p1588_p2 = scmp.lt.s32.totalorder %s176_s28, %s176_s28 }
  0x1e   : > { %p1581_p7 = scmp.ne.s32.totalorder %s176_s28, %s1580_s14  ;;  %p1589_p6 = scmp.lt.s32.totalorder %s1580_s14, %s1580_s14 }
  0x20   : > { %p1583_p9 = pnand %p1581_p7, %p1569_p12  ;;  %p1590_p4 = por %p1589_p6, %p1588_p2 }
  0x22   : > { %p1584_p1 = pneg %p1583_p9 }
  0x24   : > { %p1591_p8 = pnand %p1590_p4, %p1584_p1 }
  0x26   : > { %1594 = shalt.err (!%p1591_p8)
}
  0x27   : > { %s1727_s15 = smov 64   ;;  %s1728_s16 = smov 4  }
  0x28   : > { %1380 = dma.hbm_to_vmem [thread:$0]  (!%p1814_p10), %s2107_s1, 2048, %s176_s28, [#allocation6], %s1727_s15, %s1727_s15, %s1728_s16  }
  0x29   : > { %s1595_s7 = scalar_lea.hbm %s2109_s3, 2048 }
  0x2a   : > { %p1596_p11 = scmp.ne.s32.totalorder %s2109_s3, %s1595_s7  ;;  %p1602_p4 = scmp.lt.u32.totalorder %s1595_s7, %s2109_s3 }
  0x2c   : > { %p1598_p1 = pnand %p1596_p11, %p1569_p12 }
  0x2e   : > { %p1599_p2 = pneg %p1598_p1 }
  0x30   : > { %p1604_p6 = pnand %p1602_p4, %p1599_p2 }
  0x32   : > { %1607 = shalt.err (!%p1604_p6)
}
  0x33   : > { %s1608_s28 = scalar_lea.vmem %s1818_s6, 2048  ;;  %p1616_p3 = scmp.lt.s32.totalorder %s1818_s6, %s1818_s6 }
  0x34   : > { %p1609_p8 = scmp.ne.s32.totalorder %s1818_s6, %s1608_s28  ;;  %p1617_p5 = scmp.lt.s32.totalorder %s1608_s28, %s1608_s28 }
  0x36   : > { %p1611_p13 = pnand %p1609_p8, %p1569_p12  ;;  %p1618_p7 = por %p1617_p5, %p1616_p3 }
  0x38   : > { %p1612_p0 = pneg %p1611_p13 }
  0x3a   : > { %p1619_p9 = pnand %p1618_p7, %p1612_p0 }
  0x3c   : > { %1622 = shalt.err (!%p1619_p9)
}
  0x3d   : > { %s1729_s12 = smov 128   ;;  %s1730_s13 = smov 8  }
  0x3e   : > { %1383 = dma.hbm_to_vmem [thread:$0]  (!%p1814_p10), %s2109_s3, 2048, %s1818_s6, [#allocation6], %s1729_s12, %s1729_s12, %s1730_s13  }
  0x3f   : > { %s1871_s16 = sadd.s32 1, %s1723_s21   ;;  %s29_s23 = sadd.s32 1, %s1719_s20 }
  0x40   : > { %s26_s17 = ssub.s32 %s1723_s21, %s1871_s16  ;;  %p36_p11 = scmp.ne.s32.totalorder %s1719_s20, %s1715_s19 }
  0x41   : > { %p27_p12 = scmp.eq.s32.totalorder %s26_s17, 0  ;;  %p37_p1 = scmp.eq.s32.totalorder %s1723_s21, 0 }
  0x42   : > { %p2119_p4 = scmp.eq.s32.totalorder %s1787_s22, 3  ;;  %p1394_p8 = scmp.lt.s32.totalorder %s1723_s21, 4 }
  0x43   : > { %s1880_s27 = scalar_select %p27_p12, %s1719_s20, %s29_s23  }
  0x44   : > { %p38_p2 = por %p37_p1, %p36_p11  ;;  %p1884_p6 = por %p2119_p4, %p36_p11 }
  0x45   : > { %s208_s30 = sand.u32 1, %s1719_s20   ;;  %s1282_s6 = sshll.u32 %s1723_s21, 11 }
  0x46   : > { %s1201_s7 = sshll.u32 %s208_s30, 7  ;;  %s1894_s10 = scalar_lea.hbm %s2106_s0, %s1282_s6 }
  0x47   : > { %s212_s11 = scalar_lea.vmem [#allocation2], %s1201_s7  ;;  %p1898_p10 = pnand %p1394_p8, %p38_p2 }
  0x48   : > { %s220_s28 = sshll.u32 %s212_s11, 4  ;;  %s1902_s15 = scalar_lea.sflag [#allocation3], %s208_s30  ;;  %s1896_s28 = int_to_ptr.vmem [resolvable:$true] %s220_s28 }
  0x49   : > { %s1623_s17 = scalar_lea.hbm %s1894_s10, 2048  ;;  %p1625_p0 = pneg %p1898_p10 }
  0x4a   : > { %p1624_p13 = scmp.ne.s32.totalorder %s1894_s10, %s1623_s17  ;;  %s1628_s6 = scalar_lea.hbm %s2106_s0, 8192 }
  0x4b   : > { %p1629_p7 = scmp.lt.u32.totalorder %s1894_s10, %s2106_s0  ;;  %p1630_p9 = scmp.lt.u32.totalorder %s1628_s6, %s1623_s17 }
  0x4c   : > { %p1626_p3 = pnand %p1625_p0, %p1624_p13  ;;  %p1632_p11 = scmp.lt.u32.totalorder %s1623_s17, %s1894_s10 }
  0x4d   : > { %p1631_p12 = por %p1630_p9, %p1629_p7 }
  0x4e   : > { %p1627_p5 = pneg %p1626_p3 }
  0x4f   : > { %p1633_p1 = por %p1632_p11, %p1631_p12 }
  0x51   : > { %p1634_p2 = pnand %p1633_p1, %p1627_p5 }
  0x53   : > { %1637 = shalt.err (!%p1634_p2)
}
  0x54   : > { %s1638_s30 = scalar_lea.vmem %s1896_s28, 2048  ;;  %s1731_s11 = smov [#allocation2]  }
  0x55   : > { %p1639_p4 = scmp.ne.s32.totalorder %s1896_s28, %s1638_s30  ;;  %s1643_s23 = sshll.u32 %s1731_s11, 4  ;;  %s1644_s23 = int_to_ptr.vmem [resolvable:$false] %s1643_s23 }
  0x56   : > { %s1645_s7 = scalar_lea.vmem %s1644_s23, 4096  ;;  %p1646_p3 = scmp.lt.s32.totalorder %s1896_s28, %s1644_s23 }
  0x57   : > { %p1641_p8 = pnand %p1639_p4, %p1625_p0  ;;  %p1647_p7 = scmp.lt.s32.totalorder %s1645_s7, %s1638_s30 }
  0x59   : > { %p1642_p13 = pneg %p1641_p8  ;;  %p1648_p9 = por %p1647_p7, %p1646_p3 }
  0x5b   : > { %p1649_p12 = pnand %p1648_p9, %p1642_p13 }
  0x5d   : > { %1652 = shalt.err (!%p1649_p12)
}
  0x5e   : > { %1387 = dma.hbm_to_vmem [thread:$0]  (!%p1898_p10), %s1894_s10, 2048, %s1896_s28, %s1902_s15, %s1729_s12, %s1729_s12, %s1730_s13  }
  0x5f   : > { %p2122_p0 = scmp.ne.s32.totalorder %s2117_s26, 0 }
  0x60   : > { %s1936_s17 = sand.u32 (!%p2122_p0), 1, %s1715_s19   ;;  %p2123_p5 = scmp.ne.s32.totalorder (!%p2122_p0), %s2115_s24, 0 }
  0x61   : > { %232 = sbr.rel (%p2122_p0) target bundleno = 671 (0x29f), region = 40  ;;  %s1206_s6 = sshll.u32 (!%p2122_p0), %s1936_s17, 7 }
  0x62   : > { %s235_s8 = scalar_lea.sflag (!%p2122_p0), [#allocation3], %s1936_s17  ;;  %s1942_s14 = scalar_lea.vmem (!%p2122_p0), [#allocation2], %s1206_s6 }
  0x68   : > { %1698 = dma.done.wait (%p2123_p5), %s235_s8, 2048  }
  0x69   : > { %1700 = vsyncadd (%p2123_p5), %s235_s8, 4294965248  ;;  %p2124_p10 = scmp.eq.s32.totalorder %s1787_s22, 0 }
  0x6b   : > { %1702 = dma.done.wait (%p2124_p10), [#allocation6], 4096   ;;  %p2125_p11 = pmov %p2124_p10 }
  0x6c   : > { %v1439_v0 = vld [vmem:[#allocation5 + $0x40] sm:$0xff]   ;;  %v1441_v2 = vld [vmem:[#allocation5 + $0x48] sm:$0xff]   ;;  %v1443_v4 = vld [vmem:[#allocation5 + $0x50] sm:$0xff]   ;;  %v1732_v48 = vmov 0   ;;  %s2018_s10 = scalar_lea.vmem [#allocation8], %s1206_s6  ;;  %s1300_s28 = sshll.u32 %s1787_s22, 11 }
  0x6d   : > { %1704 = vsyncadd (%p2125_p11), [#allocation6], 4294963200  ;;  %v1440_v1 = vld [vmem:[#allocation5] sm:$0xff]   ;;  %1301 = vmatprep.subr.bf16.mxu0 %v1439_v0  ;;  %v1442_v3 = vld [vmem:[#allocation5 + $0x8] sm:$0xff]   ;;  %768 = vmatprep.mubr.bf16.mxu1 %v1732_v48  ;;  %s1104_s15 = sshll.u32 %s2018_s10, 4  ;;  %s2059_s11 = scalar_lea.hbm %s2111_s5, %s1300_s28  ;;  %s2061_s15 = int_to_ptr.vmem [resolvable:$true] %s1104_s15 }
  0x6e   : > { %1302 = vmatpush3.bf16.msra.mxu0 %v1440_v1  ;;  %v1444_v5 = vld [vmem:[#allocation5 + $0x10] sm:$0xff]   ;;  %v1445_v6 = vld [vmem:[#allocation5 + $0x58] sm:$0xff]   ;;  %v1447_v8 = vld [vmem:[#allocation5 + $0x60] sm:$0xff]   ;;  %s1090_s23 = scalar_lea.sflag [#allocation4], %s1936_s17  ;;  %s1653_s7 = scalar_lea.vmem %s2061_s15, 2048 }
  0x6f   : > { %1303 = vmatprep.subr.bf16.mxu0 %v1441_v2  ;;  %v1446_v7 = vld [vmem:[#allocation5 + $0x18] sm:$0xff]   ;;  %v1448_v9 = vld [vmem:[#allocation5 + $0x20] sm:$0xff]   ;;  %v1449_v10 = vld [vmem:[#allocation5 + $0x68] sm:$0xff]   ;;  %p1654_p1 = scmp.ne.s32.totalorder %s2061_s15, %s1653_s7  ;;  %s1733_s22 = smov [#allocation8]  }
  0x70   : > { %v1457_v11 = vld [vmem:[%s1942_s14 + $0x4] ss:$8 sps:$4 sm:$0xff]   ;;  %v1451_v13 = vld [vmem:[#allocation5 + $0x70] sm:$0xff]   ;;  %v1453_v15 = vld [vmem:[#allocation5 + $0x78] sm:$0xff]   ;;  %s1657_s6 = sshll.u32 %s1733_s22, 4  ;;  %s1658_s6 = int_to_ptr.vmem [resolvable:$false] %s1657_s6 }
  0x71   : > { %v1450_v12 = vld [vmem:[#allocation5 + $0x28] sm:$0xff]   ;;  %539 = vmatprep.mubr.bf16.mxu0 %v1457_v11  ;;  %v1452_v14 = vld [vmem:[#allocation5 + $0x30] sm:$0xff]   ;;  %v1454_v16 = vld [vmem:[#allocation5 + $0x38] sm:$0xff]   ;;  %p1655_p2 = pnand %p1654_p1, %p1884_p6  ;;  %s1659_s8 = scalar_lea.vmem %s1658_s6, 4096 }
  0x72   : > { %1304 = vmatpush3.bf16.msra.mxu0 %v1442_v3  ;;  %v1479_v17 = vld [vmem:[#allocation7 + $0x4] ss:$8 sps:$4 sm:$0xff]   ;;  %v1481_v18 = vld [vmem:[#allocation7] ss:$8 sps:$4 sm:$0xff]   ;;  %v1482_v19 = vld [vmem:[#allocation7 + $0x14] ss:$8 sps:$4 sm:$0xff]   ;;  %p1660_p8 = scmp.lt.s32.totalorder %s2061_s15, %s1658_s6  ;;  %p1661_p13 = scmp.lt.s32.totalorder %s1659_s8, %s1653_s7 }
  0x73   : > { %1305 = vmatprep.subr.bf16.mxu0 %v1443_v4  ;;  %736 = vmatprep.subr.bf16.mxu1 %v1479_v17  ;;  %v1455_v20 = vld [vmem:[%s1942_s14] ss:$8 sps:$4 sm:$0xff]   ;;  %v1484_v21 = vld [vmem:[#allocation7 + $0x10] ss:$8 sps:$4 sm:$0xff]   ;;  %v1458_v22 = vld [vmem:[%s1942_s14 + $0x14] ss:$8 sps:$4 sm:$0xff]   ;;  %p1656_p4 = pneg %p1655_p2 }
  0x74   : > { %737 = vmatpush1.bf16.msra.mxu1 %v1481_v18  ;;  %v1485_v23 = vld [vmem:[#allocation7 + $0x24] ss:$8 sps:$4 sm:$0xff]   ;;  %v1487_v24 = vld [vmem:[#allocation7 + $0x20] ss:$8 sps:$4 sm:$0xff]   ;;  %v1488_v25 = vld [vmem:[#allocation7 + $0x34] ss:$8 sps:$4 sm:$0xff]   ;;  %p1662_p3 = por %p1661_p13, %p1660_p8 }
  0x75   : > { %738 = vmatprep.subr.bf16.mxu1 %v1482_v19  ;;  %v1460_v26 = vld [vmem:[%s1942_s14 + $0x10] ss:$8 sps:$4 sm:$0xff]   ;;  %v1461_v28 = vld [vmem:[%s1942_s14 + $0x24] ss:$8 sps:$4 sm:$0xff]   ;;  %v1493_v30 = vld [vmem:[#allocation7 + $0x40] ss:$8 sps:$4 sm:$0xff]  }
  0x76   : > { %1306 = vmatpush3.bf16.msra.mxu0 %v1444_v5  ;;  %v1490_v27 = vld [vmem:[#allocation7 + $0x30] ss:$8 sps:$4 sm:$0xff]   ;;  %v1491_v29 = vld [vmem:[#allocation7 + $0x44] ss:$8 sps:$4 sm:$0xff]   ;;  %v1463_v31 = vld [vmem:[%s1942_s14 + $0x20] ss:$8 sps:$4 sm:$0xff]   ;;  %p1663_p7 = pnand %p1662_p3, %p1656_p4 }
  0x77   : > { %1307 = vmatprep.subr.bf16.mxu0 %v1445_v6  ;;  %v1464_v32 = vld [vmem:[%s1942_s14 + $0x34] ss:$8 sps:$4 sm:$0xff]   ;;  %v1466_v33 = vld [vmem:[%s1942_s14 + $0x30] ss:$8 sps:$4 sm:$0xff]   ;;  %v1467_v34 = vld [vmem:[%s1942_s14 + $0x44] ss:$8 sps:$4 sm:$0xff]  }
  0x78   : > { %739 = vmatpush1.bf16.msra.mxu1 %v1484_v21  ;;  %v1469_v35 = vld [vmem:[%s1942_s14 + $0x40] ss:$8 sps:$4 sm:$0xff]   ;;  %v1470_v36 = vld [vmem:[%s1942_s14 + $0x54] ss:$8 sps:$4 sm:$0xff]   ;;  %v1472_v37 = vld [vmem:[%s1942_s14 + $0x50] ss:$8 sps:$4 sm:$0xff]  }
  0x79   : > { %740 = vmatprep.subr.bf16.mxu1 %v1485_v23  ;;  %v1473_v38 = vld [vmem:[%s1942_s14 + $0x64] ss:$8 sps:$4 sm:$0xff]   ;;  %v1475_v39 = vld [vmem:[%s1942_s14 + $0x60] ss:$8 sps:$4 sm:$0xff]   ;;  %v1476_v40 = vld [vmem:[%s1942_s14 + $0x74] ss:$8 sps:$4 sm:$0xff]  }
  0x7a   : > { %1308 = vmatpush3.bf16.msra.mxu0 %v1446_v7  ;;  %v1478_v41 = vld [vmem:[%s1942_s14 + $0x70] ss:$8 sps:$4 sm:$0xff]   ;;  %v1494_v42 = vld [vmem:[#allocation7 + $0x54] ss:$8 sps:$4 sm:$0xff]   ;;  %v1497_v44 = vld [vmem:[#allocation7 + $0x64] ss:$8 sps:$4 sm:$0xff]  }
  0x7b   : > { %1309 = vmatprep.subr.bf16.mxu0 %v1447_v8  ;;  %v1496_v43 = vld [vmem:[#allocation7 + $0x50] ss:$8 sps:$4 sm:$0xff]   ;;  %v1499_v45 = vld [vmem:[#allocation7 + $0x60] ss:$8 sps:$4 sm:$0xff]   ;;  %v1500_v46 = vld [vmem:[#allocation7 + $0x74] ss:$8 sps:$4 sm:$0xff]  }
  0x7c   : > { %741 = vmatpush1.bf16.msra.mxu1 %v1487_v24  ;;  %v1502_v47 = vld [vmem:[#allocation7 + $0x70] ss:$8 sps:$4 sm:$0xff]   ;;  %v1972_v50 = vld [vmem:[%s2108_s2] ss:$0 sm:$0xff] }
  0x7d   : > { %742 = vmatprep.subr.bf16.mxu1 %v1488_v25 }
  0x7e   : > { %1310 = vmatpush3.bf16.msra.mxu0 %v1448_v9 }
  0x7f   : > { %1311 = vmatprep.subr.bf16.mxu0 %v1449_v10 }
  0x80   : > { %743 = vmatpush1.bf16.msra.mxu1 %v1490_v27 }
  0x81   : > { %744 = vmatprep.subr.bf16.mxu1 %v1491_v29 }
  0x82   : > { %1312 = vmatpush3.bf16.msra.mxu0 %v1450_v12 }
  0x83   : > { %1313 = vmatprep.subr.bf16.mxu0 %v1451_v13 }
  0x84   : > { %745 = vmatpush1.bf16.msra.mxu1 %v1493_v30 }
  0x85   : > { %746 = vmatprep.subr.bf16.mxu1 %v1494_v42 }
  0x86   : > { %1314 = vmatpush3.bf16.msra.mxu0 %v1452_v14 }
  0x87   : > { %1315 = vmatprep.subr.bf16.mxu0 %v1453_v15 }
  0x88   : > { %747 = vmatpush1.bf16.msra.mxu1 %v1496_v43 }
  0x89   : > { %748 = vmatprep.subr.bf16.mxu1 %v1497_v44 }
  0x8a   : > { %1316 = vmatpush3.bf16.msra.mxu0 %v1454_v16 }
  0x8c   : > { %749 = vmatpush1.bf16.msra.mxu1 %v1499_v45 }
  0x8d   : > { %540 = vmatmul.mubr.bf16.vlgmr.msra.gmra.mrb[0].mxu0 %v1455_v20  ;;  %750 = vmatprep.subr.bf16.mxu1 %v1500_v46 }
  0x8e   : > { %547 = vmatprep.mubr.bf16.mxu0 %v1458_v22 }
  0x90   : > { %751 = vmatpush1.bf16.msra.mxu1 %v1502_v47 }
  0x95   : > { %548 = vmatmul.mubr.bf16.gmra.mrb[4].mxu0 %v1460_v26 }
  0x96   : > { %555 = vmatprep.mubr.bf16.mxu0 %v1461_v28 }
  0x9d   : > { %556 = vmatmul.mubr.bf16.gmra.mrb[8].mxu0 %v1463_v31 }
  0x9e   : > { %563 = vmatprep.mubr.bf16.mxu0 %v1464_v32 }
  0xa5   : > { %564 = vmatmul.mubr.bf16.gmra.mrb[12].mxu0 %v1466_v33 }
  0xa6   : > { %571 = vmatprep.mubr.bf16.mxu0 %v1467_v34 }
  0xad   : > { %572 = vmatmul.mubr.bf16.gmra.mrb[16].mxu0 %v1469_v35 }
  0xae   : > { %579 = vmatprep.mubr.bf16.mxu0 %v1470_v36 }
  0xb5   : > { %580 = vmatmul.mubr.bf16.gmra.mrb[20].mxu0 %v1472_v37 }
  0xb6   : > { %587 = vmatprep.mubr.bf16.mxu0 %v1473_v38 }
  0xbd   : > { %588 = vmatmul.mubr.bf16.gmra.mrb[24].mxu0 %v1475_v39 }
  0xbe   : > { %595 = vmatprep.mubr.bf16.mxu0 %v1476_v40 }
  0xc5   : > { %596 = vmatmul.mubr.bf16.gmra.mrb[28].mxu0 %v1478_v41 }
 0x160   : > { %v1317_v49 = vpop.f32.mrb[0].mxu0 }
 0x161   : > { %v1318_v51 = vpop.f32.mrb[1].mxu0 }
 0x162   : > { %v1319_v52 = vadd.f32 %v1318_v51, %v1317_v49  ;;  %v1320_v53 = vpop.f32.mrb[2].mxu0 }
 0x163   : > { %v1321_v54 = vpop.f32.mrb[3].mxu0 }
 0x164   : > { %v542_v55 = vadd.f32 %v1319_v52, %v1972_v50  ;;  %v1322_v56 = vadd.f32 %v1321_v54, %v1320_v53 }
 0x166   : > { %v545_v57 = vadd.f32 %v1322_v56, %v1972_v50  ;;  %v604_v58 = vmax.f32 %v542_v55, 0.0 }
 0x168   : > { %v605_v59 = vmax.f32 %v545_v57, 0.0  ;;  %v1323_v60 = vpop.f32.mrb[4].mxu0 }
 0x169   : > { %v1324_v61 = vpop.f32.mrb[5].mxu0 }
 0x16a   : > { %v1325_v62 = vadd.f32 %v1324_v61, %v1323_v60  ;;  %v1326_v63 = vpop.f32.mrb[6].mxu0  ;;  %v620_v0 = vpack.c.bf16 %v605_v59, %v604_v58 }
 0x16b   : > { %v1327_v1 = vpop.f32.mrb[7].mxu0 }
 0x16c   : > { %v550_v2 = vadd.f32 %v1325_v62, %v1972_v50  ;;  %v1328_v3 = vadd.f32 %v1327_v1, %v1326_v63  ;;  %769 = vmatmul.mubr.bf16.vlgmr.msra.gmra.mrb[0].mxu1 %v620_v0 }
 0x16d   : > { %778 = vmatprep.mubr.bf16.mxu1 %v1732_v48 }
 0x16e   : > { %v553_v4 = vadd.f32 %v1328_v3, %v1972_v50  ;;  %v606_v5 = vmax.f32 %v550_v2, 0.0 }
 0x170   : > { %v607_v6 = vmax.f32 %v553_v4, 0.0  ;;  %v1329_v7 = vpop.f32.mrb[8].mxu0 }
 0x171   : > { %v1330_v8 = vpop.f32.mrb[9].mxu0 }
 0x172   : > { %v1331_v9 = vadd.f32 %v1330_v8, %v1329_v7  ;;  %v1332_v10 = vpop.f32.mrb[10].mxu0  ;;  %v621_v11 = vpack.c.bf16 %v607_v6, %v606_v5 }
 0x173   : > { %v1333_v12 = vpop.f32.mrb[11].mxu0 }
 0x174   : > { %v558_v13 = vadd.f32 %v1331_v9, %v1972_v50  ;;  %v1334_v14 = vadd.f32 %v1333_v12, %v1332_v10  ;;  %779 = vmatmul.mubr.bf16.gmra.mrb[4].mxu1 %v621_v11  ;;  %v646_v12 = vlaneseq }
 0x175   : > { %788 = vmatprep.mubr.bf16.mxu1 %v1732_v48 }
 0x176   : > { %v561_v15 = vadd.f32 %v1334_v14, %v1972_v50  ;;  %v608_v16 = vmax.f32 %v558_v13, 0.0  ;;  %v647_v13 = vshrl.u32 %v646_v12, 7 }
 0x178   : > { %v609_v17 = vmax.f32 %v561_v15, 0.0  ;;  %v1335_v18 = vpop.f32.mrb[12].mxu0  ;;  %v648_v14 = vsub.s32 0, %v647_v13  ;;  %v644_v15 = vld [vmem:[%s2110_s4] sm:$0x3] }
 0x179   : > { %v1336_v19 = vpop.f32.mrb[13].mxu0 }
 0x17a   : > { %v1337_v20 = vadd.f32 %v1336_v19, %v1335_v18  ;;  %v1338_v21 = vpop.f32.mrb[14].mxu0  ;;  %v622_v22 = vpack.c.bf16 %v609_v17, %v608_v16  ;;  %v652_v16 = vsub.s32 1, %v647_v13  ;;  %v2000_v17 = vrot.slane %v644_v15, %v648_v14 }
 0x17b   : > { %v1339_v23 = vpop.f32.mrb[15].mxu0 }
 0x17c   : > { %v566_v24 = vadd.f32 %v1337_v20, %v1972_v50  ;;  %v1340_v25 = vadd.f32 %v1339_v23, %v1338_v21  ;;  %789 = vmatmul.mubr.bf16.gmra.mrb[8].mxu1 %v622_v22  ;;  %v2002_v18 = vrot.slane %v644_v15, %v652_v16 }
 0x17d   : > { %798 = vmatprep.mubr.bf16.mxu1 %v1732_v48 }
 0x17e   : > { %v569_v26 = vadd.f32 %v1340_v25, %v1972_v50  ;;  %v610_v27 = vmax.f32 %v566_v24, 0.0 }
 0x180   : > { %v611_v28 = vmax.f32 %v569_v26, 0.0  ;;  %v1341_v29 = vpop.f32.mrb[16].mxu0 }
 0x181   : > { %v1342_v30 = vpop.f32.mrb[17].mxu0 }
 0x182   : > { %v1343_v31 = vadd.f32 %v1342_v30, %v1341_v29  ;;  %v1344_v32 = vpop.f32.mrb[18].mxu0  ;;  %v623_v33 = vpack.c.bf16 %v611_v28, %v610_v27 }
 0x183   : > { %v1345_v34 = vpop.f32.mrb[19].mxu0 }
 0x184   : > { %v574_v35 = vadd.f32 %v1343_v31, %v1972_v50  ;;  %v1346_v36 = vadd.f32 %v1345_v34, %v1344_v32  ;;  %799 = vmatmul.mubr.bf16.gmra.mrb[12].mxu1 %v623_v33 }
 0x185   : > { %808 = vmatprep.mubr.bf16.mxu1 %v1732_v48 }
 0x186   : > { %v577_v37 = vadd.f32 %v1346_v36, %v1972_v50  ;;  %v612_v38 = vmax.f32 %v574_v35, 0.0 }
 0x188   : > { %v613_v39 = vmax.f32 %v577_v37, 0.0  ;;  %v1347_v40 = vpop.f32.mrb[20].mxu0 }
 0x189   : > { %v1348_v41 = vpop.f32.mrb[21].mxu0 }
 0x18a   : > { %v1349_v42 = vadd.f32 %v1348_v41, %v1347_v40  ;;  %v1350_v43 = vpop.f32.mrb[22].mxu0  ;;  %v624_v44 = vpack.c.bf16 %v613_v39, %v612_v38 }
 0x18b   : > { %v1351_v45 = vpop.f32.mrb[23].mxu0 }
 0x18c   : > { %v582_v46 = vadd.f32 %v1349_v42, %v1972_v50  ;;  %v1352_v47 = vadd.f32 %v1351_v45, %v1350_v43  ;;  %809 = vmatmul.mubr.bf16.gmra.mrb[16].mxu1 %v624_v44 }
 0x18d   : > { %818 = vmatprep.mubr.bf16.mxu1 %v1732_v48 }
 0x18e   : > { %v585_v49 = vadd.f32 %v1352_v47, %v1972_v50  ;;  %v614_v51 = vmax.f32 %v582_v46, 0.0 }
 0x190   : > { %v615_v52 = vmax.f32 %v585_v49, 0.0  ;;  %v1353_v53 = vpop.f32.mrb[24].mxu0 }
 0x191   : > { %v1354_v54 = vpop.f32.mrb[25].mxu0 }
 0x192   : > { %v1355_v55 = vadd.f32 %v1354_v54, %v1353_v53  ;;  %v1356_v56 = vpop.f32.mrb[26].mxu0  ;;  %v625_v57 = vpack.c.bf16 %v615_v52, %v614_v51 }
 0x193   : > { %v1357_v58 = vpop.f32.mrb[27].mxu0 }
 0x194   : > { %v590_v59 = vadd.f32 %v1355_v55, %v1972_v50  ;;  %v1358_v60 = vadd.f32 %v1357_v58, %v1356_v56  ;;  %819 = vmatmul.mubr.bf16.gmra.mrb[20].mxu1 %v625_v57 }
 0x195   : > { %828 = vmatprep.mubr.bf16.mxu1 %v1732_v48 }
 0x196   : > { %v593_v61 = vadd.f32 %v1358_v60, %v1972_v50  ;;  %v616_v62 = vmax.f32 %v590_v59, 0.0 }
 0x198   : > { %v617_v63 = vmax.f32 %v593_v61, 0.0  ;;  %v1359_v0 = vpop.f32.mrb[28].mxu0 }
 0x199   : > { %v1360_v1 = vpop.f32.mrb[29].mxu0 }
 0x19a   : > { %v1361_v2 = vadd.f32 %v1360_v1, %v1359_v0  ;;  %v1362_v3 = vpop.f32.mrb[30].mxu0  ;;  %v626_v4 = vpack.c.bf16 %v617_v63, %v616_v62 }
 0x19b   : > { %v1363_v5 = vpop.f32.mrb[31].mxu0 }
 0x19c   : > { %v598_v6 = vadd.f32 %v1361_v2, %v1972_v50  ;;  %v1364_v7 = vadd.f32 %v1363_v5, %v1362_v3  ;;  %829 = vmatmul.mubr.bf16.gmra.mrb[24].mxu1 %v626_v4 }
 0x19d   : > { %838 = vmatprep.mubr.bf16.mxu1 %v1732_v48 }
 0x19e   : > { %v601_v8 = vadd.f32 %v1364_v7, %v1972_v50  ;;  %v618_v9 = vmax.f32 %v598_v6, 0.0 }
 0x1a0   : > { %v619_v10 = vmax.f32 %v601_v8, 0.0 }
 0x1a2   : > { %v627_v11 = vpack.c.bf16 %v619_v10, %v618_v9 }
 0x1a4   : > { %839 = vmatmul.mubr.bf16.gmra.mrb[28].mxu1 %v627_v11 }
 0x23f   : > { %v770_v19 = vpop.f32.mrb[0].mxu1 }
 0x240   : > { %v771_v48 = vadd.f32 %v770_v19, %v2000_v17  ;;  %v772_v50 = vpop.f32.mrb[1].mxu1 }
 0x241   : > { %v773_v20 = vadd.f32 %v772_v50, %v2002_v18  ;;  %v774_v21 = vpop.f32.mrb[2].mxu1 }
 0x242   : > { %v849_v22 = vmul.f32 0.5, %v771_v48  ;;  %v775_v23 = vadd.f32 %v774_v21, %v2000_v17  ;;  %v776_v24 = vpop.f32.mrb[3].mxu1 }
 0x243   : > { %v850_v25 = vmul.f32 0.5, %v773_v20  ;;  %v777_v26 = vadd.f32 %v776_v24, %v2002_v18 }
 0x244   : > { %1503 = vtanh.f32 %v849_v22  ;;  %v851_v27 = vmul.f32 0.5, %v775_v23 }
 0x245   : > { %1505 = vtanh.f32 %v850_v25  ;;  %v852_v28 = vmul.f32 0.5, %v777_v26 }
 0x246   : > { %1507 = vtanh.f32 %v851_v27 }
 0x247   : > { %1509 = vtanh.f32 %v852_v28  ;;  %v780_v29 = vpop.f32.mrb[4].mxu1 }
 0x248   : > { %v781_v30 = vadd.f32 %v780_v29, %v2000_v17  ;;  %v782_v31 = vpop.f32.mrb[5].mxu1 }
 0x249   : > { %v783_v32 = vadd.f32 %v782_v31, %v2002_v18  ;;  %v784_v33 = vpop.f32.mrb[6].mxu1 }
 0x24a   : > { %v853_v34 = vmul.f32 0.5, %v781_v30  ;;  %v785_v35 = vadd.f32 %v784_v33, %v2000_v17  ;;  %v786_v36 = vpop.f32.mrb[7].mxu1 }
 0x24b   : > { %v854_v37 = vmul.f32 0.5, %v783_v32  ;;  %v787_v38 = vadd.f32 %v786_v36, %v2002_v18 }
 0x24c   : > { %1511 = vtanh.f32 %v853_v34  ;;  %v855_v39 = vmul.f32 0.5, %v785_v35 }
 0x24d   : > { %1513 = vtanh.f32 %v854_v37  ;;  %v856_v40 = vmul.f32 0.5, %v787_v38 }
 0x24e   : > { %v1504_v41 = vpop.eup %1503  ;;  %1515 = vtanh.f32 %v855_v39 }
 0x24f   : > { %v1506_v42 = vpop.eup %1505  ;;  %v913_v43 = vadd.f32 1.0, %v1504_v41  ;;  %1517 = vtanh.f32 %v856_v40  ;;  %v790_v44 = vpop.f32.mrb[8].mxu1 }
 0x250   : > { %v1508_v45 = vpop.eup %1507  ;;  %v914_v46 = vadd.f32 1.0, %v1506_v42  ;;  %v791_v47 = vadd.f32 %v790_v44, %v2000_v17  ;;  %v792_v49 = vpop.f32.mrb[9].mxu1 }
 0x251   : > { %v1510_v51 = vpop.eup %1509  ;;  %v945_v52 = vmul.f32 0.5, %v913_v43  ;;  %v915_v53 = vadd.f32 1.0, %v1508_v45  ;;  %v793_v54 = vadd.f32 %v792_v49, %v2002_v18  ;;  %v794_v55 = vpop.f32.mrb[10].mxu1 }
 0x252   : > { %v946_v56 = vmul.f32 0.5, %v914_v46  ;;  %v916_v57 = vadd.f32 1.0, %v1510_v51  ;;  %v857_v58 = vmul.f32 0.5, %v791_v47  ;;  %v795_v59 = vadd.f32 %v794_v55, %v2000_v17  ;;  %v796_v60 = vpop.f32.mrb[11].mxu1 }
 0x253   : > { %v947_v61 = vmul.f32 0.5, %v915_v53  ;;  %v858_v62 = vmul.f32 0.5, %v793_v54  ;;  %v797_v63 = vadd.f32 %v796_v60, %v2002_v18 }
 0x254   : > { %v1283_v0 = vpack.c.bf16 %v946_v56, %v945_v52  ;;  %v948_v1 = vmul.f32 0.5, %v916_v57  ;;  %1519 = vtanh.f32 %v857_v58  ;;  %v859_v2 = vmul.f32 0.5, %v795_v59 }
 0x255   : > { %1521 = vtanh.f32 %v858_v62  ;;  %v860_v3 = vmul.f32 0.5, %v797_v63 }
 0x256   : > { %v1512_v4 = vpop.eup %1511  ;;  %1073 = vst [vmem:[%s2018_s10] sm:$0xff] %v1283_v0  ;;  %v1284_v5 = vpack.c.bf16 %v948_v1, %v947_v61  ;;  %1523 = vtanh.f32 %v859_v2 }
 0x257   : > { %v1514_v6 = vpop.eup %1513  ;;  %v917_v7 = vadd.f32 1.0, %v1512_v4  ;;  %1525 = vtanh.f32 %v860_v3  ;;  %v800_v8 = vpop.f32.mrb[12].mxu1 }
 0x258   : > { %v1516_v9 = vpop.eup %1515  ;;  %1074 = vst [vmem:[%s2018_s10 + $0x8] sm:$0xff] %v1284_v5  ;;  %v918_v10 = vadd.f32 1.0, %v1514_v6  ;;  %v801_v11 = vadd.f32 %v800_v8, %v2000_v17  ;;  %v802_v12 = vpop.f32.mrb[13].mxu1 }
 0x259   : > { %v1518_v13 = vpop.eup %1517  ;;  %v949_v14 = vmul.f32 0.5, %v917_v7  ;;  %v919_v15 = vadd.f32 1.0, %v1516_v9  ;;  %v803_v16 = vadd.f32 %v802_v12, %v2002_v18  ;;  %v804_v19 = vpop.f32.mrb[14].mxu1 }
 0x25a   : > { %v950_v48 = vmul.f32 0.5, %v918_v10  ;;  %v920_v50 = vadd.f32 1.0, %v1518_v13  ;;  %v861_v20 = vmul.f32 0.5, %v801_v11  ;;  %v805_v21 = vadd.f32 %v804_v19, %v2000_v17  ;;  %v806_v22 = vpop.f32.mrb[15].mxu1 }
 0x25b   : > { %v951_v23 = vmul.f32 0.5, %v919_v15  ;;  %v862_v24 = vmul.f32 0.5, %v803_v16  ;;  %v807_v25 = vadd.f32 %v806_v22, %v2002_v18 }
 0x25c   : > { %v1285_v26 = vpack.c.bf16 %v950_v48, %v949_v14  ;;  %v952_v27 = vmul.f32 0.5, %v920_v50  ;;  %1527 = vtanh.f32 %v861_v20  ;;  %v863_v28 = vmul.f32 0.5, %v805_v21 }
 0x25d   : > { %1529 = vtanh.f32 %v862_v24  ;;  %v864_v29 = vmul.f32 0.5, %v807_v25 }
 0x25e   : > { %v1520_v30 = vpop.eup %1519  ;;  %1075 = vst [vmem:[%s2018_s10 + $0x10] sm:$0xff] %v1285_v26  ;;  %v1286_v31 = vpack.c.bf16 %v952_v27, %v951_v23  ;;  %1531 = vtanh.f32 %v863_v28 }
 0x25f   : > { %v1522_v32 = vpop.eup %1521  ;;  %v921_v33 = vadd.f32 1.0, %v1520_v30  ;;  %1533 = vtanh.f32 %v864_v29  ;;  %v810_v34 = vpop.f32.mrb[16].mxu1 }
 0x260   : > { %v1524_v35 = vpop.eup %1523  ;;  %1076 = vst [vmem:[%s2018_s10 + $0x18] sm:$0xff] %v1286_v31  ;;  %v922_v36 = vadd.f32 1.0, %v1522_v32  ;;  %v811_v37 = vadd.f32 %v810_v34, %v2000_v17  ;;  %v812_v38 = vpop.f32.mrb[17].mxu1 }
 0x261   : > { %v1526_v39 = vpop.eup %1525  ;;  %v953_v40 = vmul.f32 0.5, %v921_v33  ;;  %v923_v41 = vadd.f32 1.0, %v1524_v35  ;;  %v813_v42 = vadd.f32 %v812_v38, %v2002_v18  ;;  %v814_v43 = vpop.f32.mrb[18].mxu1 }
 0x262   : > { %v954_v44 = vmul.f32 0.5, %v922_v36  ;;  %v924_v45 = vadd.f32 1.0, %v1526_v39  ;;  %v865_v46 = vmul.f32 0.5, %v811_v37  ;;  %v815_v47 = vadd.f32 %v814_v43, %v2000_v17  ;;  %v816_v49 = vpop.f32.mrb[19].mxu1 }
 0x263   : > { %v955_v51 = vmul.f32 0.5, %v923_v41  ;;  %v866_v52 = vmul.f32 0.5, %v813_v42  ;;  %v817_v53 = vadd.f32 %v816_v49, %v2002_v18 }
 0x264   : > { %v1287_v54 = vpack.c.bf16 %v954_v44, %v953_v40  ;;  %v956_v55 = vmul.f32 0.5, %v924_v45  ;;  %1535 = vtanh.f32 %v865_v46  ;;  %v867_v56 = vmul.f32 0.5, %v815_v47 }
 0x265   : > { %1537 = vtanh.f32 %v866_v52  ;;  %v868_v57 = vmul.f32 0.5, %v817_v53 }
 0x266   : > { %v1528_v58 = vpop.eup %1527  ;;  %1077 = vst [vmem:[%s2018_s10 + $0x20] sm:$0xff] %v1287_v54  ;;  %v1288_v59 = vpack.c.bf16 %v956_v55, %v955_v51  ;;  %1539 = vtanh.f32 %v867_v56 }
 0x267   : > { %v1530_v60 = vpop.eup %1529  ;;  %v925_v61 = vadd.f32 1.0, %v1528_v58  ;;  %1541 = vtanh.f32 %v868_v57  ;;  %v820_v62 = vpop.f32.mrb[20].mxu1 }
 0x268   : > { %v1532_v63 = vpop.eup %1531  ;;  %1078 = vst [vmem:[%s2018_s10 + $0x28] sm:$0xff] %v1288_v59  ;;  %v926_v0 = vadd.f32 1.0, %v1530_v60  ;;  %v821_v1 = vadd.f32 %v820_v62, %v2000_v17  ;;  %v822_v2 = vpop.f32.mrb[21].mxu1 }
 0x269   : > { %v1534_v3 = vpop.eup %1533  ;;  %v957_v4 = vmul.f32 0.5, %v925_v61  ;;  %v927_v5 = vadd.f32 1.0, %v1532_v63  ;;  %v823_v6 = vadd.f32 %v822_v2, %v2002_v18  ;;  %v824_v7 = vpop.f32.mrb[22].mxu1 }
 0x26a   : > { %v958_v8 = vmul.f32 0.5, %v926_v0  ;;  %v928_v9 = vadd.f32 1.0, %v1534_v3  ;;  %v869_v10 = vmul.f32 0.5, %v821_v1  ;;  %v825_v11 = vadd.f32 %v824_v7, %v2000_v17  ;;  %v826_v12 = vpop.f32.mrb[23].mxu1 }
 0x26b   : > { %v959_v13 = vmul.f32 0.5, %v927_v5  ;;  %v870_v14 = vmul.f32 0.5, %v823_v6  ;;  %v827_v15 = vadd.f32 %v826_v12, %v2002_v18 }
 0x26c   : > { %v1289_v16 = vpack.c.bf16 %v958_v8, %v957_v4  ;;  %v960_v19 = vmul.f32 0.5, %v928_v9  ;;  %1543 = vtanh.f32 %v869_v10  ;;  %v871_v48 = vmul.f32 0.5, %v825_v11 }
 0x26d   : > { %1545 = vtanh.f32 %v870_v14  ;;  %v872_v50 = vmul.f32 0.5, %v827_v15 }
 0x26e   : > { %v1536_v20 = vpop.eup %1535  ;;  %1079 = vst [vmem:[%s2018_s10 + $0x30] sm:$0xff] %v1289_v16  ;;  %v1290_v21 = vpack.c.bf16 %v960_v19, %v959_v13  ;;  %1547 = vtanh.f32 %v871_v48 }
 0x26f   : > { %v1538_v22 = vpop.eup %1537  ;;  %v929_v23 = vadd.f32 1.0, %v1536_v20  ;;  %1549 = vtanh.f32 %v872_v50  ;;  %v830_v24 = vpop.f32.mrb[24].mxu1 }
 0x270   : > { %v1540_v25 = vpop.eup %1539  ;;  %1080 = vst [vmem:[%s2018_s10 + $0x38] sm:$0xff] %v1290_v21  ;;  %v930_v26 = vadd.f32 1.0, %v1538_v22  ;;  %v831_v27 = vadd.f32 %v830_v24, %v2000_v17  ;;  %v832_v28 = vpop.f32.mrb[25].mxu1 }
 0x271   : > { %v1542_v29 = vpop.eup %1541  ;;  %v961_v30 = vmul.f32 0.5, %v929_v23  ;;  %v931_v31 = vadd.f32 1.0, %v1540_v25  ;;  %v833_v32 = vadd.f32 %v832_v28, %v2002_v18  ;;  %v834_v33 = vpop.f32.mrb[26].mxu1 }
 0x272   : > { %v962_v34 = vmul.f32 0.5, %v930_v26  ;;  %v932_v35 = vadd.f32 1.0, %v1542_v29  ;;  %v873_v36 = vmul.f32 0.5, %v831_v27  ;;  %v835_v37 = vadd.f32 %v834_v33, %v2000_v17  ;;  %v836_v38 = vpop.f32.mrb[27].mxu1 }
 0x273   : > { %v963_v39 = vmul.f32 0.5, %v931_v31  ;;  %v874_v40 = vmul.f32 0.5, %v833_v32  ;;  %v837_v41 = vadd.f32 %v836_v38, %v2002_v18 }
 0x274   : > { %v1291_v42 = vpack.c.bf16 %v962_v34, %v961_v30  ;;  %v964_v43 = vmul.f32 0.5, %v932_v35  ;;  %1551 = vtanh.f32 %v873_v36  ;;  %v875_v44 = vmul.f32 0.5, %v835_v37 }
 0x275   : > { %1553 = vtanh.f32 %v874_v40  ;;  %v876_v45 = vmul.f32 0.5, %v837_v41 }
 0x276   : > { %v1544_v46 = vpop.eup %1543  ;;  %1081 = vst [vmem:[%s2018_s10 + $0x40] sm:$0xff] %v1291_v42  ;;  %v1292_v47 = vpack.c.bf16 %v964_v43, %v963_v39  ;;  %1555 = vtanh.f32 %v875_v44 }
 0x277   : > { %v1546_v49 = vpop.eup %1545  ;;  %v933_v51 = vadd.f32 1.0, %v1544_v46  ;;  %1557 = vtanh.f32 %v876_v45  ;;  %v840_v52 = vpop.f32.mrb[28].mxu1 }
 0x278   : > { %v1548_v53 = vpop.eup %1547  ;;  %1082 = vst [vmem:[%s2018_s10 + $0x48] sm:$0xff] %v1292_v47  ;;  %v934_v54 = vadd.f32 1.0, %v1546_v49  ;;  %v841_v55 = vadd.f32 %v840_v52, %v2000_v17  ;;  %v842_v56 = vpop.f32.mrb[29].mxu1 }
 0x279   : > { %v1550_v57 = vpop.eup %1549  ;;  %v965_v58 = vmul.f32 0.5, %v933_v51  ;;  %v935_v59 = vadd.f32 1.0, %v1548_v53  ;;  %v843_v60 = vadd.f32 %v842_v56, %v2002_v18  ;;  %v844_v61 = vpop.f32.mrb[30].mxu1 }
 0x27a   : > { %v966_v62 = vmul.f32 0.5, %v934_v54  ;;  %v936_v63 = vadd.f32 1.0, %v1550_v57  ;;  %v877_v0 = vmul.f32 0.5, %v841_v55  ;;  %v845_v1 = vadd.f32 %v844_v61, %v2000_v17  ;;  %v846_v2 = vpop.f32.mrb[31].mxu1 }
 0x27b   : > { %v967_v3 = vmul.f32 0.5, %v935_v59  ;;  %v878_v4 = vmul.f32 0.5, %v843_v60  ;;  %v847_v5 = vadd.f32 %v846_v2, %v2002_v18 }
 0x27c   : > { %v1293_v6 = vpack.c.bf16 %v966_v62, %v965_v58  ;;  %v968_v7 = vmul.f32 0.5, %v936_v63  ;;  %1559 = vtanh.f32 %v877_v0  ;;  %v879_v8 = vmul.f32 0.5, %v845_v1 }
 0x27d   : > { %1561 = vtanh.f32 %v878_v4  ;;  %v880_v9 = vmul.f32 0.5, %v847_v5 }
 0x27e   : > { %v1552_v10 = vpop.eup %1551  ;;  %1083 = vst [vmem:[%s2018_s10 + $0x50] sm:$0xff] %v1293_v6  ;;  %v1294_v11 = vpack.c.bf16 %v968_v7, %v967_v3  ;;  %1563 = vtanh.f32 %v879_v8 }
 0x27f   : > { %v1554_v12 = vpop.eup %1553  ;;  %v937_v13 = vadd.f32 1.0, %v1552_v10  ;;  %1565 = vtanh.f32 %v880_v9 }
 0x280   : > { %v1556_v17 = vpop.eup %1555  ;;  %1084 = vst [vmem:[%s2018_s10 + $0x58] sm:$0xff] %v1294_v11  ;;  %v938_v14 = vadd.f32 1.0, %v1554_v12 }
 0x281   : > { %v1558_v15 = vpop.eup %1557  ;;  %v969_v18 = vmul.f32 0.5, %v937_v13  ;;  %v939_v16 = vadd.f32 1.0, %v1556_v17 }
 0x282   : > { %v970_v19 = vmul.f32 0.5, %v938_v14  ;;  %v940_v48 = vadd.f32 1.0, %v1558_v15 }
 0x283   : > { %v971_v50 = vmul.f32 0.5, %v939_v16 }
 0x284   : > { %v1295_v20 = vpack.c.bf16 %v970_v19, %v969_v18  ;;  %v972_v21 = vmul.f32 0.5, %v940_v48 }
 0x286   : > { %v1560_v22 = vpop.eup %1559  ;;  %1085 = vst [vmem:[%s2018_s10 + $0x60] sm:$0xff] %v1295_v20  ;;  %v1296_v23 = vpack.c.bf16 %v972_v21, %v971_v50 }
 0x287   : > { %v1562_v24 = vpop.eup %1561  ;;  %v941_v25 = vadd.f32 1.0, %v1560_v22 }
 0x288   : > { %v1564_v26 = vpop.eup %1563  ;;  %1086 = vst [vmem:[%s2018_s10 + $0x68] sm:$0xff] %v1296_v23  ;;  %v942_v27 = vadd.f32 1.0, %v1562_v24 }
 0x289   : > { %v1566_v28 = vpop.eup %1565  ;;  %v973_v29 = vmul.f32 0.5, %v941_v25  ;;  %v943_v30 = vadd.f32 1.0, %v1564_v26 }
 0x28a   : > { %v974_v31 = vmul.f32 0.5, %v942_v27  ;;  %v944_v32 = vadd.f32 1.0, %v1566_v28 }
 0x28b   : > { %v975_v33 = vmul.f32 0.5, %v943_v30 }
 0x28c   : > { %v1297_v34 = vpack.c.bf16 %v974_v31, %v973_v29  ;;  %v976_v35 = vmul.f32 0.5, %v944_v32 }
 0x28e   : > { %1087 = vst [vmem:[%s2018_s10 + $0x70] sm:$0xff] %v1297_v34  ;;  %v1298_v36 = vpack.c.bf16 %v976_v35, %v975_v33 }
 0x290   : > { %1088 = vst [vmem:[%s2018_s10 + $0x78] sm:$0xff] %v1298_v36 }
 0x291   : > { %1666 = shalt.err (!%p1663_p7)
}
 0x292   : > { %s1667_s14 = scalar_lea.hbm %s2059_s11, 2048  ;;  %s1671_s12 = scalar_lea.hbm %s2111_s5, 8192 }
 0x293   : > { %p1668_p9 = scmp.ne.s32.totalorder %s2059_s11, %s1667_s14  ;;  %p1672_p5 = scmp.lt.u32.totalorder %s2059_s11, %s2111_s5 }
 0x294   : > { %p1673_p10 = scmp.lt.u32.totalorder %s1671_s12, %s1667_s14  ;;  %p1675_p1 = scmp.lt.u32.totalorder %s1667_s14, %s2059_s11 }
 0x295   : > { %p1669_p12 = pnand %p1668_p9, %p1884_p6 }
 0x296   : > { %p1674_p11 = por %p1673_p10, %p1672_p5 }
 0x297   : > { %p1670_p0 = pneg %p1669_p12 }
 0x298   : > { %p1676_p2 = por %p1675_p1, %p1674_p11 }
 0x29a   : > { %p1677_p4 = pnand %p1676_p2, %p1670_p0 }
 0x29c   : > { %1680 = shalt.err (!%p1677_p4)
}
 0x29d   : > { %s1734_s28 = smov 128   ;;  %s1735_s9 = smov 8  }
 0x29e   : > { %1375 = dma.vmem_to_hbm [thread:$0]  (%p1884_p6), %s2061_s15, 2048, %s2059_s11, %s1090_s23, %s1734_s28, %s1734_s28, %s1735_s9  }
 0x29f PF: > { %p1397_p8 = scmp.ge.s32.totalorder %s1723_s21, 2  ;;  %s1119_s30 = sand.u32 1, %s1711_s18  }
 0x2a0   : > { %p2126_p13 = scmp.ne.s32.totalorder %s2116_s25, 0  ;;  %s1120_s7 = scalar_lea.sflag [#allocation4], %s1119_s30 }
 0x2a2   : > { %p1389_p3 = pnand %p1397_p8, %p2126_p13 }
 0x2a4   : > { %1706 = dma.done.wait (!%p1389_p3), %s1120_s7, 2048  }
 0x2a5   : > { %1708 = vsyncadd (!%p1389_p3), %s1120_s7, 4294965248  ;;  %p19_p7 = scmp.ge.s32.totalorder %s1871_s16, 6   ;;  %s2127_s18 = smov %s1715_s19 }
 0x2a6   : > { %s2128_s19 = smov %s1719_s20  ;;  %s2129_s20 = smov %s1880_s27 }
 0x2a7   : > { %s2130_s21 = smov %s1871_s16  ;;  %21 = sbr.rel (!%p19_p7) target bundleno = 6 (0x6), region = 93 }
 0x2ae   :  { %1125 = vsyncpa [#allocation3], 1 }
 0x2af   :  { %1127 = vsyncpa [#allocation3 + $0x1], 1 }
 0x2b0   :  { %1128 = vsyncpa [#allocation6], 1 }
 0x2b1   :  { %1129 = vsyncpa [#allocation4], 1 }
 0x2b2   :  { %1131 = vsyncpa [#allocation4 + $0x1], 1 }

</bundles_post_ra>
